<compile_context>
chip_gen: v7x
topology: tpu7x:2x2x1
jax: 0.10.0
libtpu: 0.0.40
codegen_flags: <defaults>
</compile_context>

<pallas_src>
import functools

import jax
import jax.numpy as jnp
from jax import lax
from jax.experimental import pallas as pl
from jax.experimental.pallas import tpu as pltpu

_EPS = 1e-12
_VMEM_BUDGET = 24 * 1024 * 1024   # double-buffered working-set budget (v7x-safe)


def _pick_batch_tile(batch, bytes_per_row, budget=_VMEM_BUDGET):
    """Largest batch tile that (a) divides batch, (b) keeps the double-buffered
    working set under `budget`, (c) keeps output second-minor dims 8-aligned
    (tile == batch or tile % 8 == 0)."""
    if batch * bytes_per_row <= budget:
        return batch
    for cand in range(batch - 1, 0, -1):
        if batch % cand == 0 and cand % 8 == 0 and cand * bytes_per_row <= budget:
            return cand
    # TODO(synk): no 8-aligned divisor fits the budget; fall back to one full
    # batch block (still correct, just unpipelined / needs a larger vmem limit).
    return batch


def _vmem_limit(needed_bytes):
    # headroom over the computed double-buffered working set; keep well under
    # v7x's 64 MiB physical VMEM, above the 16 MiB v5e scoped default.
    return int(min(56 * 1024 * 1024, max(needed_bytes + (4 << 20), 16 << 20)))


# ----------------------------------------------------------------------------
# K0: prompt_key l2 normalization (tiny, single block)
# ----------------------------------------------------------------------------
def _key_norm_kernel(key_ref, pnorm_ref):
    k = key_ref[...]                                       # (P, D)
    ss = jnp.sum(k * k, axis=1, keepdims=True)
    pnorm_ref[...] = k * lax.rsqrt(jnp.maximum(ss, jnp.float32(_EPS)))


def key_norm_pallas(prompt_key):
    P, D = prompt_key.shape
    return pl.pallas_call(
        _key_norm_kernel,
        out_shape=jax.ShapeDtypeStruct((P, D), jnp.float32),
    )(prompt_key)


# ----------------------------------------------------------------------------
# K1: max over seq + l2-normalize + similarity matmul, gridded over batch
# ----------------------------------------------------------------------------
def _sim_kernel(x_ref, pnorm_ref, xnorm_ref, sim_ref):
    x = x_ref[...]                                         # (TB, N, D)
    x_max = jnp.max(x, axis=1)                             # torch.max(x, dim=1)[0]
    ss = jnp.sum(x_max * x_max, axis=1, keepdims=True)
    x_norm = x_max * lax.rsqrt(jnp.maximum(ss, jnp.float32(_EPS)))
    xnorm_ref[...] = x_norm
    # Contract the last dims directly so the MXU consumes p_norm without an
    # explicit (P,D)->(D,P) transpose per grid step.
    sim_ref[...] = lax.dot_general(
        x_norm, pnorm_ref[...],
        dimension_numbers=(((1,), (1,)), ((), ())),
        preferred_element_type=jnp.float32)


def similarity_pallas(x_embed_3d, prompt_norm):
    B, N, D = x_embed_3d.shape
    P = prompt_norm.shape[0]
    tb = _pick_batch_tile(B, 2 * N * D * 4)                # double-buffered x rows
    grid = (B // tb,)
    needed = (2 * tb * N * D + 2 * P * D + 2 * tb * D + 2 * tb * P) * 4
    return pl.pallas_call(
        _sim_kernel,
        grid=grid,
        in_specs=[
            pl.BlockSpec((tb, N, D), lambda i: (i, 0, 0)),
            pl.BlockSpec((P, D), lambda i: (0, 0)),        # resident across grid
        ],
        out_specs=(
            pl.BlockSpec((tb, D), lambda i: (i, 0)),
            pl.BlockSpec((tb, P), lambda i: (i, 0)),
        ),
        out_shape=(
            jax.ShapeDtypeStruct((B, D), jnp.float32),     # x_embed_norm
            jax.ShapeDtypeStruct((B, P), jnp.float32),     # similarity
        ),
        compiler_params=pltpu.CompilerParams(
            dimension_semantics=("parallel",),
            vmem_limit_bytes=_vmem_limit(needed)),
    )(x_embed_3d, prompt_norm)


# ----------------------------------------------------------------------------
# K2: gather only the top_k unique prompt slabs / key rows (batch collapsed)
# ----------------------------------------------------------------------------
def _gather_kernel(idx_ref, pool_blk_ref, pnorm_ref, slab_ref, key_ref):
    k = pl.program_id(0)
    slab_ref[...] = pool_blk_ref[...]                      # gathered (1, L, D)
    pid = idx_ref[k]                                       # scalar from 1-D SMEM
    key_ref[...] = pnorm_ref[pl.ds(pid, 1), :][None]       # (1, 1, D)


def gather_prompts_pallas(idx_unique, prompt_pool, prompt_norm):
    top_k = idx_unique.shape[0]
    P, L, D = prompt_pool.shape
    grid_spec = pltpu.PrefetchScalarGridSpec(
        num_scalar_prefetch=1,
        grid=(top_k,),
        in_specs=[
            # data-dependent gather of one (L, D) prompt slab per grid step
            pl.BlockSpec((1, L, D), lambda k, idx_r: (idx_r[k], 0, 0)),
            # prompt_norm stays resident (constant block index)
            pl.BlockSpec((P, D), lambda k, idx_r: (0, 0)),
        ],
        out_specs=(
            pl.BlockSpec((1, L, D), lambda k, idx_r: (k, 0, 0)),
            pl.BlockSpec((1, 1, D), lambda k, idx_r: (k, 0, 0)),
        ),
    )
    slab, key = pl.pallas_call(
        _gather_kernel,
        grid_spec=grid_spec,
        out_shape=(
            jax.ShapeDtypeStruct((top_k, L, D), jnp.float32),
            jax.ShapeDtypeStruct((top_k, 1, D), jnp.float32),
        ),
        compiler_params=pltpu.CompilerParams(
            dimension_semantics=("parallel",)),
    )(idx_unique.astype(jnp.int32), prompt_pool, prompt_norm)
    return slab, key.reshape(top_k, D)


# ----------------------------------------------------------------------------
# K3: fused prompted_embedding = [broadcast prompt slab ; x_embed]
# ----------------------------------------------------------------------------
def _concat_kernel(prompt_ref, x_ref, out_ref):
    tb, n, d = x_ref.shape
    pkl = prompt_ref.shape[0]
    out_ref[:, pl.ds(0, pkl), :] = jnp.broadcast_to(
        prompt_ref[...][None, :, :], (tb, pkl, d))
    out_ref[:, pl.ds(pkl, n), :] = x_ref[...]


def prompted_embedding_pallas(prompt_flat, x_embed):
    PKL, D = prompt_flat.shape
    B, N, _ = x_embed.shape
    total = PKL + N
    tb = _pick_batch_tile(B, 2 * (N + total) * D * 4)
    grid = (B // tb,)
    needed = (2 * PKL * D + 2 * tb * N * D + 2 * tb * total * D) * 4
    return pl.pallas_call(
        _concat_kernel,
        grid=grid,
        in_specs=[
            pl.BlockSpec((PKL, D), lambda i: (0, 0)),      # resident across grid
            pl.BlockSpec((tb, N, D), lambda i: (i, 0, 0)),
        ],
        out_specs=pl.BlockSpec((tb, total, D), lambda i: (i, 0, 0)),
        out_shape=jax.ShapeDtypeStruct((B, total, D), jnp.float32),
        compiler_params=pltpu.CompilerParams(
            dimension_semantics=("parallel",),
            vmem_limit_bytes=_vmem_limit(needed)),
    )(prompt_flat, x_embed)


# ----------------------------------------------------------------------------
# DPrompt module (parameters + forward glue)
# ----------------------------------------------------------------------------
def init_dprompt_params(key, pool_size, length, embed_dim):
    k1, k2 = jax.random.split(key)
    prompt_pool = jax.random.uniform(
        k1, (pool_size, length, embed_dim), jnp.float32, -1.0, 1.0)
    prompt_key = jax.random.uniform(
        k2, (pool_size, embed_dim), jnp.float32, -1.0, 1.0)
    return {"prompt_pool": prompt_pool, "prompt_key": prompt_key}


@functools.partial(jax.jit, static_argnames=("top_k",))
def _dprompt_core(params, x_for_sim, x_embed, *, top_k):
    prompt_pool = params["prompt_pool"]
    prompt_key = params["prompt_key"]
    P, L, D = prompt_pool.shape
    B = x_embed.shape[0]

    # K0 + K1
    prompt_norm = key_norm_pallas(prompt_key)
    x_embed_norm, similarity = similarity_pallas(x_for_sim, prompt_norm)

    # top-k + batchwise_prompt vote (glue).  torch.unique(return_counts) is
    # emulated with a fixed-size bincount (equivalent for top_k=1; the
    # pad-with-min corner case differs for top_k > 1).
    _, idx_topk = lax.top_k(similarity, top_k)                   # (B, top_k)
    counts = jnp.zeros((P,), jnp.int32).at[idx_topk.reshape(-1)].add(1)
    _, major_id = lax.top_k(counts, top_k)
    major_id = major_id.astype(jnp.int32)                        # (top_k,)

    # K2: gather only the top_k unique prompt slabs / key rows.
    prompt_slab, sel_key_u = gather_prompts_pallas(major_id, prompt_pool, prompt_norm)

    idx = jnp.broadcast_to(major_id[None, :], (B, top_k))
    selected_key = jnp.broadcast_to(sel_key_u[None, :, :], (B, top_k, D))
    # reduce_sim moved out of the kernel (selected keys identical across batch).
    reduce_sim = jnp.sum(selected_key * x_embed_norm[:, None, :]) / B

    # K3: fused concat (prompted_embedding), replaces jnp.concatenate.
    prompted = prompted_embedding_pallas(prompt_slab.reshape(top_k * L, D), x_embed)

    return (idx, prompt_norm, x_embed_norm, similarity,
            selected_key, reduce_sim, prompted)


def dprompt_forward(params, x_embed, prompt_mask=None, cls_features=None,
                    top_k=1, train_count=(), test_count=()):
    """Mirrors DPrompt.forward.  x_embed: (B, N, D) float32."""
    B, N, D = x_embed.shape
    L = params["prompt_pool"].shape[1]

    if cls_features is not None:
        # max over a singleton seq dim == identity -> reuse the same kernel.
        x_for_sim = cls_features[:, None, :]
    else:
        x_for_sim = x_embed

    (idx, prompt_norm, x_embed_norm, similarity, selected_key,
     reduce_sim, prompted_embedding) = _dprompt_core(
        params, x_for_sim, x_embed, top_k=top_k)
    total_prompt_len = top_k * L

    if prompt_mask is not None:
        # TODO(synk): prompt_mask path (per-row idx, no batchwise vote) stays in
        # plain JAX; the batch-collapsed gather kernel assumes broadcast idx.
        idx = prompt_mask.astype(jnp.int32)
        k_mask = idx.shape[1]
        batched_prompt_raw = jnp.take(params["prompt_pool"], idx, axis=0)
        selected_key = jnp.take(prompt_norm, idx, axis=0)
        reduce_sim = jnp.sum(selected_key * x_embed_norm[:, None, :]) / B
        batched_prompt = batched_prompt_raw.reshape(B, k_mask * L, D)
        prompted_embedding = jnp.concatenate([batched_prompt, x_embed], axis=1)
        total_prompt_len = k_mask * L

    out = {}
    out["prompt_idx"] = idx
    out["prompt_norm"] = prompt_norm
    out["x_embed_norm"] = x_embed_norm
    out["similarity"] = similarity
    out["selected_key"] = selected_key
    out["d_reduce_sim"] = reduce_sim
    out["total_prompt_len"] = total_prompt_len
    out["prompted_embedding"] = prompted_embedding
    out["train_prompt_selection"] = train_count
    out["test_d_prompt_selection"] = test_count
    return out


# ----------------------------------------------------------------------------
# Pure-JAX reference (sanity check)
# ----------------------------------------------------------------------------
def _reference(params, x_embed, top_k=1):
    def l2n(x):
        ss = jnp.sum(x * x, axis=1, keepdims=True)
        return x * lax.rsqrt(jnp.maximum(ss, 1e-12))

    B = x_embed.shape[0]
    P = params["prompt_pool"].shape[0]
    xm = jnp.max(x_embed, axis=1)
    pn = l2n(params["prompt_key"])
    xn = l2n(xm)
    sim = xn @ pn.T
    _, idx = lax.top_k(sim, top_k)
    counts = jnp.zeros((P,), jnp.int32).at[idx.reshape(-1)].add(1)
    _, major = lax.top_k(counts, top_k)
    idx = jnp.broadcast_to(major[None, :], (B, top_k))
    sel_key = jnp.take(pn, idx, axis=0)
    reduce_sim = jnp.sum(sel_key * xn[:, None, :]) / B
    prompted = jnp.concatenate(
        [jnp.take(params["prompt_pool"], idx, axis=0).reshape(B, -1, x_embed.shape[-1]),
         x_embed], axis=1)
    return idx, sim, reduce_sim, prompted, xn, pn


if __name__ == "__main__":
    # Small, module-consistent shapes.
    B, N, D = 2, 8, 32          # batch, seq, embed_dim
    POOL, LEN, TOPK = 4, 4, 1   # pool_size, length, top_k

    root = jax.random.PRNGKey(0)
    k_param, k_x = jax.random.split(root)

    params = init_dprompt_params(k_param, POOL, LEN, D)
    x_embed = jax.random.normal(k_x, (B, N, D), jnp.float32)

    out = dprompt_forward(params, x_embed, top_k=TOPK)
    jax.block_until_ready(out["prompted_embedding"])
    jax.block_until_ready(out["d_reduce_sim"])

    # sanity check against a pure-JAX reference
    ref_idx, ref_sim, ref_rs, ref_pe, ref_xn, ref_pn = _reference(params, x_embed, TOPK)
    assert jnp.array_equal(out["prompt_idx"], ref_idx)
    assert jnp.allclose(out["similarity"], ref_sim, atol=1e-4, rtol=1e-4)
    assert jnp.allclose(out["x_embed_norm"], ref_xn, atol=1e-5, rtol=1e-5)
    assert jnp.allclose(out["prompt_norm"], ref_pn, atol=1e-5, rtol=1e-5)
    assert jnp.allclose(out["d_reduce_sim"], ref_rs, atol=1e-4, rtol=1e-4)
    assert jnp.allclose(out["prompted_embedding"], ref_pe, atol=1e-4, rtol=1e-4)
    assert out["prompted_embedding"].shape == (B, TOPK * LEN + N, D)

    print("KERNEL_OK")
</pallas_src>

<mosaic_0001>
module attributes {stable_mosaic.version = 11 : i64} {
  func.func @_sim_kernel(%arg0: i32, %arg1: memref<2x8x32xf32, #tpu.memory_space<vmem>>, %arg2: memref<4x32xf32, #tpu.memory_space<vmem>>, %arg3: memref<2x32xf32, #tpu.memory_space<vmem>>, %arg4: memref<2x4xf32, #tpu.memory_space<vmem>>) attributes {dimension_semantics = [#tpu.dimension_semantics<parallel>], iteration_bounds = array<i64: 1>, scalar_prefetch = 0 : i64, scratch_operands = 0 : i64, tpu.core_type = #tpu.core_type<tc>, window_params = [{transform_indices = @transform_0, window_bounds = array<i64: 2, 8, 32>}, {pipeline_mode = #tpu.pipeline_mode<synchronous>, transform_indices = @transform_1, window_bounds = array<i64: 4, 32>}, {transform_indices = @transform_2, window_bounds = array<i64: 2, 32>}, {transform_indices = @transform_3, window_bounds = array<i64: 2, 4>}]} {
    %c0 = arith.constant 0 : index
    %c0_0 = arith.constant 0 : index
    %c0_1 = arith.constant 0 : index
    %0 = vector.load %arg1[%c0, %c0_0, %c0_1] : memref<2x8x32xf32, #tpu.memory_space<vmem>>, vector<2x8x32xf32>
    %cst = arith.constant dense<0xFF800000> : vector<2x32xf32>
    %1 = vector.multi_reduction <maximumf>, %0, %cst [1] : vector<2x8x32xf32> to vector<2x32xf32>
    %2 = arith.mulf %1, %1 : vector<2x32xf32>
    %cst_2 = arith.constant dense<0.000000e+00> : vector<2xf32>
    %3 = vector.multi_reduction <add>, %2, %cst_2 [1] : vector<2x32xf32> to vector<2xf32>
    %4 = vector.shape_cast %3 : vector<2xf32> to vector<2x1xf32>
    %cst_3 = arith.constant 9.99999996E-13 : f32
    %5 = vector.broadcast %cst_3 : f32 to vector<2x1xf32>
    %6 = arith.maximumf %4, %5 : vector<2x1xf32>
    %7 = math.rsqrt %6 : vector<2x1xf32>
    %8 = vector.broadcast %7 : vector<2x1xf32> to vector<2x32xf32>
    %9 = arith.mulf %1, %8 : vector<2x32xf32>
    %c0_4 = arith.constant 0 : index
    %c0_5 = arith.constant 0 : index
    %10 = vector.load %arg3[%c0_4, %c0_5] : memref<2x32xf32, #tpu.memory_space<vmem>>, vector<2x32xf32>
    tpu.vector_store %arg3[%c0_4, %c0_5], %9 {strides = array<i32>} : memref<2x32xf32, #tpu.memory_space<vmem>>, vector<2x32xf32>,
    %c0_6 = arith.constant 0 : index
    %c0_7 = arith.constant 0 : index
    %11 = vector.load %arg2[%c0_6, %c0_7] : memref<4x32xf32, #tpu.memory_space<vmem>>, vector<4x32xf32>
    %cst_8 = arith.constant dense<0.000000e+00> : vector<2x4xf32>
    %12 = tpu.matmul %9, %11, %cst_8 {dimension_numbers = #tpu.dot_dimension_numbers<[1], [1], [0], [0], [0, 0, 1, 0], [], []>} : vector<2x32xf32>, vector<4x32xf32>, vector<2x4xf32> -> vector<2x4xf32>
    %c0_9 = arith.constant 0 : index
    %c0_10 = arith.constant 0 : index
    %13 = vector.load %arg4[%c0_9, %c0_10] : memref<2x4xf32, #tpu.memory_space<vmem>>, vector<2x4xf32>
    tpu.vector_store %arg4[%c0_9, %c0_10], %12 {strides = array<i32>} : memref<2x4xf32, #tpu.memory_space<vmem>>, vector<2x4xf32>,
    return
  }
  func.func @transform_0(%arg0: i32) -> (i32, i32, i32) {
    %c0_i32 = arith.constant 0 : i32
    %c0_i32_0 = arith.constant 0 : i32
    %c0_i32_1 = arith.constant 0 : i32
    return %arg0, %c0_i32, %c0_i32_0 : i32, i32, i32
  }
  func.func @transform_1(%arg0: i32) -> (i32, i32) {
    %c0_i32 = arith.constant 0 : i32
    %c0_i32_0 = arith.constant 0 : i32
    %c0_i32_1 = arith.constant 0 : i32
    return %c0_i32, %c0_i32_0 : i32, i32
  }
  func.func @transform_2(%arg0: i32) -> (i32, i32) {
    %c0_i32 = arith.constant 0 : i32
    %c0_i32_0 = arith.constant 0 : i32
    return %arg0, %c0_i32 : i32, i32
  }
  func.func @transform_3(%arg0: i32) -> (i32, i32) {
    %c0_i32 = arith.constant 0 : i32
    %c0_i32_0 = arith.constant 0 : i32
    return %arg0, %c0_i32 : i32, i32
  }
}

module attributes {stable_mosaic.version = 11 : i64} {
  func.func @_key_norm_kernel(%arg0: memref<4x32xf32, #tpu.memory_space<vmem>>, %arg1: memref<4x32xf32, #tpu.memory_space<vmem>>) attributes {dimension_semantics = [], scalar_prefetch = 0 : i64, scratch_operands = 0 : i64, tpu.core_type = #tpu.core_type<tc>} {
    %c0 = arith.constant 0 : index
    %c0_0 = arith.constant 0 : index
    %0 = vector.load %arg0[%c0, %c0_0] : memref<4x32xf32, #tpu.memory_space<vmem>>, vector<4x32xf32>
    %1 = arith.mulf %0, %0 : vector<4x32xf32>
    %cst = arith.constant dense<0.000000e+00> : vector<4xf32>
    %2 = vector.multi_reduction <add>, %1, %cst [1] : vector<4x32xf32> to vector<4xf32>
    %3 = vector.shape_cast %2 : vector<4xf32> to vector<4x1xf32>
    %cst_1 = arith.constant 9.99999996E-13 : f32
    %4 = vector.broadcast %cst_1 : f32 to vector<4x1xf32>
    %5 = arith.maximumf %3, %4 : vector<4x1xf32>
    %6 = math.rsqrt %5 : vector<4x1xf32>
    %7 = vector.broadcast %6 : vector<4x1xf32> to vector<4x32xf32>
    %8 = arith.mulf %0, %7 : vector<4x32xf32>
    %c0_2 = arith.constant 0 : index
    %c0_3 = arith.constant 0 : index
    %9 = vector.load %arg1[%c0_2, %c0_3] : memref<4x32xf32, #tpu.memory_space<vmem>>, vector<4x32xf32>
    tpu.vector_store %arg1[%c0_2, %c0_3], %8 {strides = array<i32>} : memref<4x32xf32, #tpu.memory_space<vmem>>, vector<4x32xf32>,
    return
  }
}

module attributes {stable_mosaic.version = 11 : i64} {
  func.func @_gather_kernel(%arg0: i32, %arg1: memref<1xi32, #tpu.memory_space<smem>>, %arg2: memref<1x4x32xf32, #tpu.memory_space<vmem>>, %arg3: memref<4x32xf32, #tpu.memory_space<vmem>>, %arg4: memref<1x4x32xf32, #tpu.memory_space<vmem>>, %arg5: memref<1x1x32xf32, #tpu.memory_space<vmem>>) attributes {dimension_semantics = [#tpu.dimension_semantics<parallel>], iteration_bounds = array<i64: 1>, scalar_prefetch = 1 : i64, scratch_operands = 0 : i64, tpu.core_type = #tpu.core_type<tc>, window_params = [{transform_indices = @transform_0, window_bounds = array<i64: 1, 4, 32>}, {pipeline_mode = #tpu.pipeline_mode<synchronous>, transform_indices = @transform_1, window_bounds = array<i64: 4, 32>}, {transform_indices = @transform_2, window_bounds = array<i64: 1, 4, 32>}, {transform_indices = @transform_3, window_bounds = array<i64: 1, 1, 32>}]} {
    %c0 = arith.constant 0 : index
    %c0_0 = arith.constant 0 : index
    %c0_1 = arith.constant 0 : index
    %0 = vector.load %arg2[%c0, %c0_0, %c0_1] : memref<1x4x32xf32, #tpu.memory_space<vmem>>, vector<1x4x32xf32>
    %c0_2 = arith.constant 0 : index
    %c0_3 = arith.constant 0 : index
    %c0_4 = arith.constant 0 : index
    %1 = vector.load %arg4[%c0_2, %c0_3, %c0_4] : memref<1x4x32xf32, #tpu.memory_space<vmem>>, vector<1x4x32xf32>
    tpu.vector_store %arg4[%c0_2, %c0_3, %c0_4], %0 {strides = array<i32>} : memref<1x4x32xf32, #tpu.memory_space<vmem>>, vector<1x4x32xf32>,
    %2 = arith.index_cast %arg0 : i32 to index
    %3 = memref.load %arg1[%2] : memref<1xi32, #tpu.memory_space<smem>>
    %4 = arith.index_cast %3 : i32 to index
    %c0_5 = arith.constant 0 : index
    %5 = vector.load %arg3[%4, %c0_5] : memref<4x32xf32, #tpu.memory_space<vmem>>, vector<1x32xf32>
    %6 = vector.shape_cast %5 : vector<1x32xf32> to vector<1x1x32xf32>
    %c0_6 = arith.constant 0 : index
    %c0_7 = arith.constant 0 : index
    %c0_8 = arith.constant 0 : index
    %7 = vector.load %arg5[%c0_6, %c0_7, %c0_8] : memref<1x1x32xf32, #tpu.memory_space<vmem>>, vector<1x1x32xf32>
    tpu.vector_store %arg5[%c0_6, %c0_7, %c0_8], %6 {strides = array<i32>} : memref<1x1x32xf32, #tpu.memory_space<vmem>>, vector<1x1x32xf32>,
    return
  }
  func.func @transform_0(%arg0: i32, %arg1: memref<1xi32, #tpu.memory_space<smem>>) -> (i32, i32, i32) {
    %0 = arith.index_cast %arg0 : i32 to index
    %1 = memref.load %arg1[%0] : memref<1xi32, #tpu.memory_space<smem>>
    %c0_i32 = arith.constant 0 : i32
    %c0_i32_0 = arith.constant 0 : i32
    %c0_i32_1 = arith.constant 0 : i32
    return %1, %c0_i32, %c0_i32_0 : i32, i32, i32
  }
  func.func @transform_1(%arg0: i32, %arg1: memref<1xi32, #tpu.memory_space<smem>>) -> (i32, i32) {
    %c0_i32 = arith.constant 0 : i32
    %c0_i32_0 = arith.constant 0 : i32
    %c0_i32_1 = arith.constant 0 : i32
    return %c0_i32, %c0_i32_0 : i32, i32
  }
  func.func @transform_2(%arg0: i32, %arg1: memref<1xi32, #tpu.memory_space<smem>>) -> (i32, i32, i32) {
    %c0_i32 = arith.constant 0 : i32
    %c0_i32_0 = arith.constant 0 : i32
    %c0_i32_1 = arith.constant 0 : i32
    return %arg0, %c0_i32, %c0_i32_0 : i32, i32, i32
  }
  func.func @transform_3(%arg0: i32, %arg1: memref<1xi32, #tpu.memory_space<smem>>) -> (i32, i32, i32) {
    %c0_i32 = arith.constant 0 : i32
    %c0_i32_0 = arith.constant 0 : i32
    %c0_i32_1 = arith.constant 0 : i32
    return %arg0, %c0_i32, %c0_i32_0 : i32, i32, i32
  }
}

module attributes {stable_mosaic.version = 11 : i64} {
  func.func @_concat_kernel(%arg0: i32, %arg1: memref<4x32xf32, #tpu.memory_space<vmem>>, %arg2: memref<2x8x32xf32, #tpu.memory_space<vmem>>, %arg3: memref<2x12x32xf32, #tpu.memory_space<vmem>>) attributes {dimension_semantics = [#tpu.dimension_semantics<parallel>], iteration_bounds = array<i64: 1>, scalar_prefetch = 0 : i64, scratch_operands = 0 : i64, tpu.core_type = #tpu.core_type<tc>, window_params = [{pipeline_mode = #tpu.pipeline_mode<synchronous>, transform_indices = @transform_0, window_bounds = array<i64: 4, 32>}, {transform_indices = @transform_1, window_bounds = array<i64: 2, 8, 32>}, {transform_indices = @transform_2, window_bounds = array<i64: 2, 12, 32>}]} {
    %c0 = arith.constant 0 : index
    %c0_0 = arith.constant 0 : index
    %0 = vector.load %arg1[%c0, %c0_0] : memref<4x32xf32, #tpu.memory_space<vmem>>, vector<4x32xf32>
    %1 = vector.shape_cast %0 : vector<4x32xf32> to vector<1x4x32xf32>
    %2 = vector.shape_cast %1 : vector<1x4x32xf32> to vector<1x4x32xf32>
    %3 = vector.broadcast %2 : vector<1x4x32xf32> to vector<2x4x32xf32>
    %c0_1 = arith.constant 0 : index
    %c0_2 = arith.constant 0 : index
    %c0_3 = arith.constant 0 : index
    %4 = vector.load %arg3[%c0_1, %c0_2, %c0_3] : memref<2x12x32xf32, #tpu.memory_space<vmem>>, vector<2x4x32xf32>
    tpu.vector_store %arg3[%c0_1, %c0_2, %c0_3], %3 {strides = array<i32>} : memref<2x12x32xf32, #tpu.memory_space<vmem>>, vector<2x4x32xf32>,
    %c0_4 = arith.constant 0 : index
    %c0_5 = arith.constant 0 : index
    %c0_6 = arith.constant 0 : index
    %5 = vector.load %arg2[%c0_4, %c0_5, %c0_6] : memref<2x8x32xf32, #tpu.memory_space<vmem>>, vector<2x8x32xf32>
    %c0_7 = arith.constant 0 : index
    %c4 = arith.constant 4 : index
    %c0_8 = arith.constant 0 : index
    %6 = vector.load %arg3[%c0_7, %c4, %c0_8] : memref<2x12x32xf32, #tpu.memory_space<vmem>>, vector<2x8x32xf32>
    tpu.vector_store %arg3[%c0_7, %c4, %c0_8], %5 {strides = array<i32>} : memref<2x12x32xf32, #tpu.memory_space<vmem>>, vector<2x8x32xf32>,
    return
  }
  func.func @transform_0(%arg0: i32) -> (i32, i32) {
    %c0_i32 = arith.constant 0 : i32
    %c0_i32_0 = arith.constant 0 : i32
    %c0_i32_1 = arith.constant 0 : i32
    return %c0_i32, %c0_i32_0 : i32, i32
  }
  func.func @transform_1(%arg0: i32) -> (i32, i32, i32) {
    %c0_i32 = arith.constant 0 : i32
    %c0_i32_0 = arith.constant 0 : i32
    %c0_i32_1 = arith.constant 0 : i32
    return %arg0, %c0_i32, %c0_i32_0 : i32, i32, i32
  }
  func.func @transform_2(%arg0: i32) -> (i32, i32, i32) {
    %c0_i32 = arith.constant 0 : i32
    %c0_i32_0 = arith.constant 0 : i32
    %c0_i32_1 = arith.constant 0 : i32
    return %arg0, %c0_i32, %c0_i32_0 : i32, i32, i32
  }
}

</mosaic_0001>

<bundles_post_ra>
// kernel: custom-call
= control target key start
LH: loop header
LB: loop body
LE: loop exit
PB: predicated region body
PF: predicated region fallthrough
CT: control target
= control target key end

     0   :  { %5 = vsyncpa [#allocation9], 0  ;;  %s1165_s0 = inlined_call_operand.vmem [shape: f32[2,4], index: 0, kind: input, shape index: {}]   ;;  %s1166_s1 = inlined_call_operand.hbm [shape: f32[2,1], index: 1, kind: output, shape index: {0}]   ;;  %s1167_s2 = inlined_call_operand.vmem [shape: s32[2,1], index: 2, kind: output, shape index: {1}]  }
   0x1   :  { %v28_v0 = vld [vmem:[%s1165_s0] sm:$0x3]  ;;  %v46_v1 = vlaneseq  ;;  %v1039_v23 = vmov 2147483648   ;;  %v1040_v24 = vmov 2147483647   ;;  %s1044_s6 = smov [#allocation8]  }
   0x2   :  { %29 = vst [vmem:[#allocation16] sm:$0x3] %v28_v0  ;;  %75 = vst [vmem:[#allocation13] sm:$0xff] %v1039_v23  ;;  %s936_s7 = sshll.u32 %s1044_s6, 4  ;;  %s937_s7 = int_to_ptr.vmem [resolvable:$true] %s936_s7 }
   0x3   :  { %v1064_v2 = vshrl.u32 %v46_v1, 7  ;;  %v47_v3 = vand.u32 127, %v46_v1  ;;  %76 = vst [vmem:[#allocation15] sm:$0xff] %v1040_v24  ;;  %s1015_s8 = scalar_lea.vmem %s937_s7, 32  ;;  %p1020_p3 = scmp.lt.s32.totalorder %s937_s7, %s937_s7 }
   0x4   :  { %p1016_p2 = scmp.ne.s32.totalorder %s937_s7, %s1015_s8  ;;  %p1021_p4 = scmp.lt.s32.totalorder %s1015_s8, %s1015_s8 }
   0x5   :  { %v50_v4 = vshrl.u32 %v1064_v2, 1 }
   0x6   :  { %p1022_p5 = por %p1021_p4, %p1020_p3 }
   0x7   :  { %v52_v5 = vmul.u32 128, %v50_v4 }
   0x8   :  { %p1023_p6 = pnand %p1022_p5, %p1016_p2 }
   0x9   :  { %v53_v6 = vadd.s32 %v52_v5, %v47_v3  ;;  %v55_v7 = vld [vmem:[#allocation16] sm:$0xff] }
   0xa   :  { %vm56_vm0 = vcmp.lt.s32.totalorder %v55_v7, 0  ;;  %v57_v8 = vsub.s32 2147483647, %v55_v7 }
   0xb   :  { %vm60_vm1 = vcmp.lt.s32.totalorder %v53_v6, 4  ;;  %v88_v9 = vrot.slane %v53_v6, 2 }
   0xc   :  { %v58_v10 = vsel %vm56_vm0, %v57_v8, %v55_v7 }
   0xd   :  { %v61_v11 = vsel %vm60_vm1, %v58_v10, 2147483648  ;;  %vm92_vm2 = vcmp.lt.s32.totalorder %v88_v9, %v53_v6 }
   0xe   :  { %62 = vst [vmem:[#allocation16] sm:$0xff] %v61_v11  ;;  %v87_v12 = vrot.slane %v61_v11, 2 }
  0x10   :  { %vm90_vm3 = vcmp.gt.s32.totalorder %v87_v12, %v61_v11  ;;  %vm91_vm4 = vcmp.eq.s32.totalorder %v87_v12, %v61_v11 }
  0x11   :  { %vm93_vm5 = vmand %vm91_vm4, %vm92_vm2 }
  0x12   :  { %vm94_vm6 = vmor %vm90_vm3, %vm93_vm5 }
  0x13   :  { %v95_v13 = vsel %vm94_vm6, %v87_v12, %v61_v11  ;;  %v96_v14 = vsel %vm94_vm6, %v88_v9, %v53_v6 }
  0x14   :  { %v98_v15 = vrot.slane %v95_v13, 2  ;;  %v99_v16 = vrot.slane %v96_v14, 2 }
  0x16   :  { %vm101_vm7 = vcmp.gt.s32.totalorder %v98_v15, %v95_v13  ;;  %vm102_vm8 = vcmp.eq.s32.totalorder %v98_v15, %v95_v13  ;;  %vm103_vm9 = vcmp.lt.s32.totalorder %v99_v16, %v96_v14 }
  0x17   :  { %vm104_vm10 = vmand %vm102_vm8, %vm103_vm9 }
  0x18   :  { %vm105_vm11 = vmor %vm101_vm7, %vm104_vm10 }
  0x19   :  { %v106_v17 = vsel %vm105_vm11, %v98_v15, %v95_v13  ;;  %v107_v18 = vsel %vm105_vm11, %v99_v16, %v96_v14 }
  0x1a   :  { %v109_v19 = vrot.slane %v106_v17, 2  ;;  %v110_v20 = vrot.slane %v107_v18, 2 }
  0x1c   :  { %vm112_vm12 = vcmp.gt.s32.totalorder %v109_v19, %v106_v17  ;;  %vm113_vm13 = vcmp.eq.s32.totalorder %v109_v19, %v106_v17  ;;  %vm114_vm14 = vcmp.lt.s32.totalorder %v110_v20, %v107_v18 }
  0x1d   :  { %vm115_vm15 = vmand %vm113_vm13, %vm114_vm14 }
  0x1e   :  { %vm116_vm0 = vmor %vm112_vm12, %vm115_vm15 }
  0x1f   :  { %v118_v21 = vsel %vm116_vm0, %v110_v20, %v107_v18  ;;  %v117_v22 = vsel %vm116_vm0, %v109_v19, %v106_v17 }
  0x20   :  { %152 = vxpose.xlu1.b32.start [1/16] %v118_v21, 128  ;;  %120 = vxpose.xlu0.b32.start [1/16] %v117_v22, 128 }
  0x24   :  { %153 = vxpose.xlu1.b32.cont [2/16] %v118_v21, 128  ;;  %121 = vxpose.xlu0.b32.cont [2/16] %v117_v22, 128 }
  0x28   :  { %154 = vxpose.xlu1.b32.cont [3/16] %v118_v21, 128  ;;  %122 = vxpose.xlu0.b32.cont [3/16] %v117_v22, 128 }
  0x2c   :  { %155 = vxpose.xlu1.b32.cont [4/16] %v118_v21, 128  ;;  %123 = vxpose.xlu0.b32.cont [4/16] %v117_v22, 128 }
  0x30   :  { %156 = vxpose.xlu1.b32.cont [5/16] %v118_v21, 128  ;;  %124 = vxpose.xlu0.b32.cont [5/16] %v117_v22, 128 }
  0x34   :  { %157 = vxpose.xlu1.b32.cont [6/16] %v118_v21, 128  ;;  %125 = vxpose.xlu0.b32.cont [6/16] %v117_v22, 128 }
  0x38   :  { %158 = vxpose.xlu1.b32.cont [7/16] %v118_v21, 128  ;;  %126 = vxpose.xlu0.b32.cont [7/16] %v117_v22, 128 }
  0x3c   :  { %159 = vxpose.xlu1.b32.cont [8/16] %v118_v21, 128  ;;  %127 = vxpose.xlu0.b32.cont [8/16] %v117_v22, 128 }
  0x40   :  { %160 = vxpose.xlu1.b32.cont [9/16] %v118_v21, 128  ;;  %128 = vxpose.xlu0.b32.cont [9/16] %v117_v22, 128 }
  0x44   :  { %161 = vxpose.xlu1.b32.cont [10/16] %v118_v21, 128  ;;  %129 = vxpose.xlu0.b32.cont [10/16] %v117_v22, 128 }
  0x48   :  { %162 = vxpose.xlu1.b32.cont [11/16] %v118_v21, 128  ;;  %130 = vxpose.xlu0.b32.cont [11/16] %v117_v22, 128 }
  0x4c   :  { %163 = vxpose.xlu1.b32.cont [12/16] %v118_v21, 128  ;;  %131 = vxpose.xlu0.b32.cont [12/16] %v117_v22, 128 }
  0x50   :  { %164 = vxpose.xlu1.b32.cont [13/16] %v118_v21, 128  ;;  %132 = vxpose.xlu0.b32.cont [13/16] %v117_v22, 128 }
  0x54   :  { %165 = vxpose.xlu1.b32.cont [14/16] %v118_v21, 128  ;;  %133 = vxpose.xlu0.b32.cont [14/16] %v117_v22, 128 }
  0x58   :  { %166 = vxpose.xlu1.b32.cont [15/16] %v118_v21, 128  ;;  %134 = vxpose.xlu0.b32.cont [15/16] %v117_v22, 128 }
  0x5c   :  { %167 = vxpose.xlu1.b32.end [16/16] %v118_v21, 128  ;;  %135 = vxpose.xlu0.b32.end [16/16] %v117_v22, 128 }
  0xa0   :  { %v168_v25 = vpop.trf.xlu1  ;;  %v136_v26 = vpop.trf.xlu0 }
  0xa4   :  { %v169_v27 = vpop.trf.xlu1  ;;  %v137_v28 = vpop.trf.xlu0 }
  0xa5   :  { %vm188_vm1 = vcmp.lt.s32.totalorder %v169_v27, %v168_v25  ;;  %vm186_vm2 = vcmp.gt.s32.totalorder %v137_v28, %v136_v26  ;;  %vm187_vm3 = vcmp.eq.s32.totalorder %v137_v28, %v136_v26 }
  0xa6   :  { %vm189_vm4 = vmand %vm187_vm3, %vm188_vm1 }
  0xa7   :  { %vm190_vm5 = vmor %vm186_vm2, %vm189_vm4 }
  0xa8   :  { %v191_v29 = vsel %vm190_vm5, %v137_v28, %v136_v26  ;;  %v170_v30 = vpop.trf.xlu1  ;;  %v192_v31 = vsel %vm190_vm5, %v169_v27, %v168_v25  ;;  %v138_v32 = vpop.trf.xlu0 }
  0xa9   :  { %vm197_vm6 = vcmp.lt.s32.totalorder %v170_v30, %v192_v31  ;;  %vm195_vm7 = vcmp.gt.s32.totalorder %v138_v32, %v191_v29  ;;  %vm196_vm8 = vcmp.eq.s32.totalorder %v138_v32, %v191_v29 }
  0xaa   :  { %vm198_vm9 = vmand %vm196_vm8, %vm197_vm6 }
  0xab   :  { %vm199_vm10 = vmor %vm195_vm7, %vm198_vm9 }
  0xac   :  { %v200_v33 = vsel %vm199_vm10, %v138_v32, %v191_v29  ;;  %v171_v34 = vpop.trf.xlu1  ;;  %v201_v35 = vsel %vm199_vm10, %v170_v30, %v192_v31  ;;  %v139_v36 = vpop.trf.xlu0 }
  0xad   :  { %vm206_vm11 = vcmp.lt.s32.totalorder %v171_v34, %v201_v35  ;;  %vm204_vm12 = vcmp.gt.s32.totalorder %v139_v36, %v200_v33  ;;  %vm205_vm13 = vcmp.eq.s32.totalorder %v139_v36, %v200_v33 }
  0xae   :  { %vm207_vm14 = vmand %vm205_vm13, %vm206_vm11 }
  0xaf   :  { %vm208_vm15 = vmor %vm204_vm12, %vm207_vm14 }
  0xb0   :  { %v209_v37 = vsel %vm208_vm15, %v139_v36, %v200_v33  ;;  %v172_v38 = vpop.trf.xlu1  ;;  %v210_v39 = vsel %vm208_vm15, %v171_v34, %v201_v35  ;;  %v140_v40 = vpop.trf.xlu0 }
  0xb1   :  { %vm215_vm0 = vcmp.lt.s32.totalorder %v172_v38, %v210_v39  ;;  %vm213_vm1 = vcmp.gt.s32.totalorder %v140_v40, %v209_v37  ;;  %vm214_vm2 = vcmp.eq.s32.totalorder %v140_v40, %v209_v37 }
  0xb2   :  { %vm216_vm3 = vmand %vm214_vm2, %vm215_vm0 }
  0xb3   :  { %vm217_vm4 = vmor %vm213_vm1, %vm216_vm3 }
  0xb4   :  { %v218_v41 = vsel %vm217_vm4, %v140_v40, %v209_v37  ;;  %v173_v42 = vpop.trf.xlu1  ;;  %v219_v43 = vsel %vm217_vm4, %v172_v38, %v210_v39  ;;  %v141_v44 = vpop.trf.xlu0 }
  0xb5   :  { %vm224_vm5 = vcmp.lt.s32.totalorder %v173_v42, %v219_v43  ;;  %vm222_vm6 = vcmp.gt.s32.totalorder %v141_v44, %v218_v41  ;;  %vm223_vm7 = vcmp.eq.s32.totalorder %v141_v44, %v218_v41 }
  0xb6   :  { %vm225_vm8 = vmand %vm223_vm7, %vm224_vm5 }
  0xb7   :  { %vm226_vm9 = vmor %vm222_vm6, %vm225_vm8 }
  0xb8   :  { %v227_v45 = vsel %vm226_vm9, %v141_v44, %v218_v41  ;;  %v174_v46 = vpop.trf.xlu1  ;;  %v228_v47 = vsel %vm226_vm9, %v173_v42, %v219_v43  ;;  %v142_v48 = vpop.trf.xlu0 }
  0xb9   :  { %vm233_vm10 = vcmp.lt.s32.totalorder %v174_v46, %v228_v47  ;;  %vm231_vm11 = vcmp.gt.s32.totalorder %v142_v48, %v227_v45  ;;  %vm232_vm12 = vcmp.eq.s32.totalorder %v142_v48, %v227_v45 }
  0xba   :  { %vm234_vm13 = vmand %vm232_vm12, %vm233_vm10 }
  0xbb   :  { %vm235_vm14 = vmor %vm231_vm11, %vm234_vm13 }
  0xbc   :  { %v236_v49 = vsel %vm235_vm14, %v142_v48, %v227_v45  ;;  %v175_v50 = vpop.trf.xlu1  ;;  %v237_v51 = vsel %vm235_vm14, %v174_v46, %v228_v47  ;;  %v143_v52 = vpop.trf.xlu0 }
  0xbd   :  { %vm242_vm15 = vcmp.lt.s32.totalorder %v175_v50, %v237_v51  ;;  %vm240_vm0 = vcmp.gt.s32.totalorder %v143_v52, %v236_v49  ;;  %vm241_vm1 = vcmp.eq.s32.totalorder %v143_v52, %v236_v49 }
  0xbe   :  { %vm243_vm2 = vmand %vm241_vm1, %vm242_vm15 }
  0xbf   :  { %vm244_vm3 = vmor %vm240_vm0, %vm243_vm2 }
  0xc0   :  { %v245_v53 = vsel %vm244_vm3, %v143_v52, %v236_v49  ;;  %v176_v54 = vpop.trf.xlu1  ;;  %v246_v55 = vsel %vm244_vm3, %v175_v50, %v237_v51  ;;  %v144_v56 = vpop.trf.xlu0 }
  0xc1   :  { %vm251_vm4 = vcmp.lt.s32.totalorder %v176_v54, %v246_v55  ;;  %vm249_vm5 = vcmp.gt.s32.totalorder %v144_v56, %v245_v53  ;;  %vm250_vm6 = vcmp.eq.s32.totalorder %v144_v56, %v245_v53 }
  0xc2   :  { %vm252_vm7 = vmand %vm250_vm6, %vm251_vm4 }
  0xc3   :  { %vm253_vm8 = vmor %vm249_vm5, %vm252_vm7 }
  0xc4   :  { %v254_v57 = vsel %vm253_vm8, %v144_v56, %v245_v53  ;;  %v177_v58 = vpop.trf.xlu1  ;;  %v255_v59 = vsel %vm253_vm8, %v176_v54, %v246_v55  ;;  %v145_v60 = vpop.trf.xlu0  ;;  %v1041_v54 = vmov 839939668  }
  0xc5   :  { %vm260_vm9 = vcmp.lt.s32.totalorder %v177_v58, %v255_v59  ;;  %vm258_vm10 = vcmp.gt.s32.totalorder %v145_v60, %v254_v57  ;;  %vm259_vm11 = vcmp.eq.s32.totalorder %v145_v60, %v254_v57  ;;  %v520_v55 = vunpack.c.l.s4 %v1041_v54 }
  0xc6   :  { %vm261_vm12 = vmand %vm259_vm11, %vm260_vm9 }
  0xc7   :  { %vm262_vm13 = vmor %vm258_vm10, %vm261_vm12  ;;  %v521_v56 = vunpack.c.0.s8 %v520_v55 }
  0xc8   :  { %v263_v61 = vsel %vm262_vm13, %v145_v60, %v254_v57  ;;  %v178_v62 = vpop.trf.xlu1  ;;  %v264_v63 = vsel %vm262_vm13, %v177_v58, %v255_v59  ;;  %v146_v0 = vpop.trf.xlu0  ;;  %v1042_v57 = vmov 1417023538  }
  0xc9   :  { %vm269_vm14 = vcmp.lt.s32.totalorder %v178_v62, %v264_v63  ;;  %vm267_vm15 = vcmp.gt.s32.totalorder %v146_v0, %v263_v61  ;;  %vm268_vm0 = vcmp.eq.s32.totalorder %v146_v0, %v263_v61  ;;  %v548_v58 = vunpack.c.l.s4 %v1042_v57 }
  0xca   :  { %vm270_vm1 = vmand %vm268_vm0, %vm269_vm14 }
  0xcb   :  { %vm271_vm2 = vmor %vm267_vm15, %vm270_vm1 }
  0xcc   :  { %v272_v3 = vsel %vm271_vm2, %v146_v0, %v263_v61  ;;  %v179_v4 = vpop.trf.xlu1  ;;  %v273_v5 = vsel %vm271_vm2, %v178_v62, %v264_v63  ;;  %v147_v6 = vpop.trf.xlu0  ;;  %v1070_v61 = vsub.s32 %v521_v56, %v1064_v2  ;;  %v541_v62 = vand.u32 4, %v1064_v2 }
  0xcd   :  { %vm278_vm3 = vcmp.lt.s32.totalorder %v179_v4, %v273_v5  ;;  %vm276_vm4 = vcmp.gt.s32.totalorder %v147_v6, %v272_v3  ;;  %vm277_vm5 = vcmp.eq.s32.totalorder %v147_v6, %v272_v3  ;;  %v549_v63 = vunpack.c.0.s8 %v548_v58 }
  0xce   :  { %vm279_vm6 = vmand %vm277_vm5, %vm278_vm3 }
  0xcf   :  { %vm280_vm7 = vmor %vm276_vm4, %vm279_vm6 }
  0xd0   :  { %v281_v7 = vsel %vm280_vm7, %v147_v6, %v272_v3  ;;  %v180_v8 = vpop.trf.xlu1  ;;  %v282_v9 = vsel %vm280_vm7, %v179_v4, %v273_v5  ;;  %v148_v10 = vpop.trf.xlu0 }
  0xd1   :  { %vm287_vm8 = vcmp.lt.s32.totalorder %v180_v8, %v282_v9  ;;  %vm285_vm9 = vcmp.gt.s32.totalorder %v148_v10, %v281_v7  ;;  %vm286_vm10 = vcmp.eq.s32.totalorder %v148_v10, %v281_v7 }
  0xd2   :  { %vm288_vm11 = vmand %vm286_vm10, %vm287_vm8 }
  0xd3   :  { %vm289_vm12 = vmor %vm285_vm9, %vm288_vm11 }
  0xd4   :  { %v290_v11 = vsel %vm289_vm12, %v148_v10, %v281_v7  ;;  %v181_v12 = vpop.trf.xlu1  ;;  %v291_v13 = vsel %vm289_vm12, %v180_v8, %v282_v9  ;;  %v149_v14 = vpop.trf.xlu0 }
  0xd5   :  { %vm296_vm13 = vcmp.lt.s32.totalorder %v181_v12, %v291_v13  ;;  %vm294_vm14 = vcmp.gt.s32.totalorder %v149_v14, %v290_v11  ;;  %vm295_vm15 = vcmp.eq.s32.totalorder %v149_v14, %v290_v11 }
  0xd6   :  { %vm297_vm0 = vmand %vm295_vm15, %vm296_vm13 }
  0xd7   :  { %vm298_vm1 = vmor %vm294_vm14, %vm297_vm0 }
  0xd8   :  { %v299_v15 = vsel %vm298_vm1, %v149_v14, %v290_v11  ;;  %v182_v16 = vpop.trf.xlu1  ;;  %v300_v17 = vsel %vm298_vm1, %v181_v12, %v291_v13  ;;  %v150_v18 = vpop.trf.xlu0  ;;  %v1043_v11 = vmov 1732584193   ;;  %v1082_v13 = vsub.s32 %v549_v63, %v1064_v2 }
  0xd9   :  { %vm305_vm2 = vcmp.lt.s32.totalorder %v182_v16, %v300_v17  ;;  %vm303_vm3 = vcmp.gt.s32.totalorder %v150_v18, %v299_v15  ;;  %vm304_vm4 = vcmp.eq.s32.totalorder %v150_v18, %v299_v15  ;;  %v576_v12 = vunpack.c.l.s4 %v1043_v11 }
  0xda   :  { %vm306_vm5 = vmand %vm304_vm4, %vm305_vm2  ;;  %v569_v14 = vand.u32 2, %v1064_v2 }
  0xdb   :  { %vm307_vm6 = vmor %vm303_vm3, %vm306_vm5 }
  0xdc   :  { %v308_v19 = vsel %vm307_vm6, %v150_v18, %v299_v15  ;;  %v183_v20 = vpop.trf.xlu1  ;;  %v309_v21 = vsel %vm307_vm6, %v182_v16, %v300_v17  ;;  %v151_v22 = vpop.trf.xlu0  ;;  %v577_v15 = vunpack.c.0.s8 %v576_v12 }
  0xdd   :  { %vm314_vm7 = vcmp.lt.s32.totalorder %v183_v20, %v309_v21  ;;  %vm312_vm8 = vcmp.gt.s32.totalorder %v151_v22, %v308_v19  ;;  %vm313_vm9 = vcmp.eq.s32.totalorder %v151_v22, %v308_v19 }
  0xde   :  { %vm315_vm10 = vmand %vm313_vm9, %vm314_vm7 }
  0xdf   :  { %vm316_vm11 = vmor %vm312_vm8, %vm315_vm10 }
  0xe0   :  { %v317_v24 = vsel %vm316_vm11, %v151_v22, %v308_v19  ;;  %v318_v25 = vsel %vm316_vm11, %v183_v20, %v309_v21  ;;  %v1096_v22 = vsub.s32 %v577_v15, %v1064_v2 }
  0xe1   :  { %v320_v26 = vrot.slane %v317_v24, 1  ;;  %v321_v27 = vrot.slane %v318_v25, 1 }
  0xe3   :  { %vm323_vm12 = vcmp.gt.s32.totalorder %v320_v26, %v317_v24  ;;  %vm324_vm13 = vcmp.eq.s32.totalorder %v320_v26, %v317_v24  ;;  %vm325_vm14 = vcmp.lt.s32.totalorder %v321_v27, %v318_v25 }
  0xe4   :  { %vm326_vm15 = vmand %vm324_vm13, %vm325_vm14 }
  0xe5   :  { %vm327_vm0 = vmor %vm323_vm12, %vm326_vm15 }
  0xe6   :  { %v328_v28 = vsel %vm327_vm0, %v320_v26, %v317_v24  ;;  %v329_v29 = vsel %vm327_vm0, %v321_v27, %v318_v25  ;;  %v597_v27 = vand.u32 1, %v1064_v2 }
  0xe7   :  { %v331_v30 = vrot.slane %v328_v28, 1  ;;  %v332_v31 = vrot.slane %v329_v29, 1 }
  0xe9   :  { %vm334_vm1 = vcmp.gt.s32.totalorder %v331_v30, %v328_v28  ;;  %vm335_vm2 = vcmp.eq.s32.totalorder %v331_v30, %v328_v28  ;;  %vm336_vm3 = vcmp.lt.s32.totalorder %v332_v31, %v329_v29 }
  0xea   :  { %vm337_vm4 = vmand %vm335_vm2, %vm336_vm3 }
  0xeb   :  { %vm338_vm5 = vmor %vm334_vm1, %vm337_vm4 }
  0xec   :  { %v339_v32 = vsel %vm338_vm5, %v331_v30, %v328_v28  ;;  %v340_v33 = vsel %vm338_vm5, %v332_v31, %v329_v29 }
  0xed   :  { %v342_v34 = vrot.slane %v339_v32, 1  ;;  %v343_v35 = vrot.slane %v340_v33, 1 }
  0xef   :  { %vm347_vm6 = vcmp.lt.s32.totalorder %v343_v35, %v340_v33  ;;  %vm345_vm7 = vcmp.gt.s32.totalorder %v342_v34, %v339_v32  ;;  %vm346_vm8 = vcmp.eq.s32.totalorder %v342_v34, %v339_v32 }
  0xf0   :  { %vm348_vm9 = vmand %vm346_vm8, %vm347_vm6 }
  0xf1   :  { %vm349_vm10 = vmor %vm345_vm7, %vm348_vm9 }
  0xf2   :  { %v350_v36 = vsel %vm349_vm10, %v342_v34, %v339_v32  ;;  %v351_v37 = vsel %vm349_vm10, %v343_v35, %v340_v33 }
  0xf3   :  { %v353_v38 = vrot.slane %v350_v36, 1  ;;  %v354_v39 = vrot.slane %v351_v37, 1 }
  0xf5   :  { %vm356_vm11 = vcmp.gt.s32.totalorder %v353_v38, %v350_v36  ;;  %vm357_vm12 = vcmp.eq.s32.totalorder %v353_v38, %v350_v36  ;;  %vm358_vm13 = vcmp.lt.s32.totalorder %v354_v39, %v351_v37 }
  0xf6   :  { %vm359_vm14 = vmand %vm357_vm12, %vm358_vm13 }
  0xf7   :  { %vm360_vm15 = vmor %vm356_vm11, %vm359_vm14 }
  0xf8   :  { %v361_v40 = vsel %vm360_vm15, %v353_v38, %v350_v36  ;;  %v362_v41 = vsel %vm360_vm15, %v354_v39, %v351_v37 }
  0xf9   :  { %v364_v42 = vrot.slane %v361_v40, 1  ;;  %v365_v43 = vrot.slane %v362_v41, 1 }
  0xfb   :  { %vm367_vm0 = vcmp.gt.s32.totalorder %v364_v42, %v361_v40  ;;  %vm368_vm1 = vcmp.eq.s32.totalorder %v364_v42, %v361_v40  ;;  %vm369_vm2 = vcmp.lt.s32.totalorder %v365_v43, %v362_v41 }
  0xfc   :  { %vm370_vm3 = vmand %vm368_vm1, %vm369_vm2 }
  0xfd   :  { %vm371_vm4 = vmor %vm367_vm0, %vm370_vm3 }
  0xfe   :  { %v372_v44 = vsel %vm371_vm4, %v364_v42, %v361_v40  ;;  %v373_v45 = vsel %vm371_vm4, %v365_v43, %v362_v41  ;;  %vm1077_vm4 = vcmp.ne.s32.totalorder %v541_v62, 0 }
  0xff   :  { %v375_v46 = vrot.slane %v372_v44, 1  ;;  %v376_v47 = vrot.slane %v373_v45, 1 }
 0x101   :  { %vm378_vm5 = vcmp.gt.s32.totalorder %v375_v46, %v372_v44  ;;  %vm379_vm6 = vcmp.eq.s32.totalorder %v375_v46, %v372_v44  ;;  %vm380_vm7 = vcmp.lt.s32.totalorder %v376_v47, %v373_v45 }
 0x102   :  { %vm381_vm8 = vmand %vm379_vm6, %vm380_vm7 }
 0x103   :  { %vm382_vm9 = vmor %vm378_vm5, %vm381_vm8 }
 0x104   :  { %v383_v48 = vsel %vm382_vm9, %v375_v46, %v372_v44  ;;  %v384_v49 = vsel %vm382_vm9, %v376_v47, %v373_v45 }
 0x105   :  { %v386_v50 = vrot.slane %v383_v48, 1  ;;  %v387_v51 = vrot.slane %v384_v49, 1 }
 0x107   :  { %vm389_vm10 = vcmp.gt.s32.totalorder %v386_v50, %v383_v48  ;;  %vm390_vm11 = vcmp.eq.s32.totalorder %v386_v50, %v383_v48  ;;  %vm391_vm12 = vcmp.lt.s32.totalorder %v387_v51, %v384_v49 }
 0x108   :  { %vm392_vm13 = vmand %vm390_vm11, %vm391_vm12 }
 0x109   :  { %vm393_vm14 = vmor %vm389_vm10, %vm392_vm13 }
 0x10a   :  { %v395_v52 = vsel %vm393_vm14, %v387_v51, %v384_v49  ;;  %v394_v53 = vsel %vm393_vm14, %v386_v50, %v383_v48 }
 0x10b   :  { %402 = vxpose.xlu0.b32.start.end [1/1] (short) (narrow) %v395_v52, 8  ;;  %398 = vst [vmem:[#allocation13] sm:$0x1] %v394_v53  ;;  %400 = vst [vmem:[#allocation15] sm:$0x1] %v395_v52 }
 0x112   :  { %v483_v59 = vld [vmem:[#allocation13 + $0x7] ss:$-1 sm:$0xff]  ;;  %v489_v60 = vld [vmem:[#allocation15 + $0x7] ss:$-1 sm:$0xff] }
 0x113   :  { %vm1001_vm15 = vcmp.lt.s32.totalorder %v483_v59, 2147483648  ;;  %vm1002_vm0 = vcmp.eq.s32.totalorder %v483_v59, 2147483648  ;;  %vm1003_vm1 = vcmp.gt.s32.totalorder %v489_v60, 2147483647 }
 0x114   :  { %vm504_vm2 = vmand %vm1002_vm0, %vm1003_vm1  ;;  %vm1089_vm0 = vcmp.ne.s32.totalorder %v569_v14, 0 }
 0x115   :  { %vm505_vm3 = vmor %vm1001_vm15, %vm504_vm2 }
 0x116   :  { %v506_v0 = vsel %vm505_vm3, 2147483648, %v483_v59  ;;  %v508_v3 = vsel %vm505_vm3, %v483_v59, 2147483648  ;;  %v510_v4 = vsel %vm505_vm3, 2147483647, %v489_v60  ;;  %v512_v5 = vsel %vm505_vm3, %v489_v60, 2147483647 }
 0x117   :  { %v525_v6 = vrot.slane %v506_v0, %v1070_v61  ;;  %v532_v7 = vrot.slane %v510_v4, %v1070_v61  ;;  %v706_v8 = vrot.slane %v508_v3, %v1070_v61  ;;  %v713_v9 = vrot.slane %v512_v5, %v1070_v61 }
 0x119   :  { %vm534_vm5 = vcmp.gt.s32.totalorder %v506_v0, %v525_v6  ;;  %vm535_vm6 = vcmp.eq.s32.totalorder %v506_v0, %v525_v6  ;;  %vm536_vm7 = vcmp.lt.s32.totalorder %v510_v4, %v532_v7  ;;  %vm716_vm9 = vcmp.eq.s32.totalorder %v508_v3, %v706_v8 }
 0x11a   :  { %vm537_vm8 = vmand %vm535_vm6, %vm536_vm7  ;;  %vm717_vm10 = vcmp.lt.s32.totalorder %v512_v5, %v713_v9  ;;  %vm715_vm12 = vcmp.gt.s32.totalorder %v508_v3, %v706_v8 }
 0x11b   :  { %vm538_vm11 = vmor %vm534_vm5, %vm537_vm8 }
 0x11c   :  { %vm543_vm13 = vmxor %vm538_vm11, %vm1077_vm4 }
 0x11d   :  { %v544_v16 = vsel %vm543_vm13, %v506_v0, %v525_v6  ;;  %v545_v17 = vsel %vm543_vm13, %v510_v4, %v532_v7  ;;  %vm718_vm14 = vmand %vm716_vm9, %vm717_vm10 }
 0x11e   :  { %v553_v18 = vrot.slane %v544_v16, %v1082_v13  ;;  %v560_v19 = vrot.slane %v545_v17, %v1082_v13  ;;  %vm719_vm15 = vmor %vm715_vm12, %vm718_vm14  ;;  %vm1105_vm14 = vcmp.ne.s32.totalorder %v597_v27, 0 }
 0x11f   :  { %vm724_vm1 = vmxor %vm719_vm15, %vm1077_vm4 }
 0x120   :  { %vm562_vm2 = vcmp.gt.s32.totalorder %v544_v16, %v553_v18  ;;  %vm563_vm3 = vcmp.eq.s32.totalorder %v544_v16, %v553_v18  ;;  %vm564_vm5 = vcmp.lt.s32.totalorder %v545_v17, %v560_v19  ;;  %v725_v21 = vsel %vm724_vm1, %v508_v3, %v706_v8 }
 0x121   :  { %vm565_vm6 = vmand %vm563_vm3, %vm564_vm5  ;;  %v726_v24 = vsel %vm724_vm1, %v512_v5, %v713_v9  ;;  %v734_v25 = vrot.slane %v725_v21, %v1082_v13 }
 0x122   :  { %vm566_vm7 = vmor %vm562_vm2, %vm565_vm6  ;;  %v741_v26 = vrot.slane %v726_v24, %v1082_v13 }
 0x123   :  { %vm571_vm8 = vmxor %vm566_vm7, %vm1089_vm0  ;;  %vm743_vm9 = vcmp.gt.s32.totalorder %v725_v21, %v734_v25  ;;  %vm744_vm10 = vcmp.eq.s32.totalorder %v725_v21, %v734_v25 }
 0x124   :  { %v572_v28 = vsel %vm571_vm8, %v544_v16, %v553_v18  ;;  %v573_v29 = vsel %vm571_vm8, %v545_v17, %v560_v19  ;;  %vm745_vm11 = vcmp.lt.s32.totalorder %v726_v24, %v741_v26 }
 0x125   :  { %v581_v30 = vrot.slane %v572_v28, %v1096_v22  ;;  %v588_v31 = vrot.slane %v573_v29, %v1096_v22  ;;  %vm746_vm12 = vmand %vm744_vm10, %vm745_vm11 }
 0x126   :  { %vm747_vm13 = vmor %vm743_vm9, %vm746_vm12 }
 0x127   :  { %vm590_vm15 = vcmp.gt.s32.totalorder %v572_v28, %v581_v30  ;;  %vm591_vm1 = vcmp.eq.s32.totalorder %v572_v28, %v581_v30  ;;  %vm592_vm2 = vcmp.lt.s32.totalorder %v573_v29, %v588_v31  ;;  %vm752_vm3 = vmxor %vm747_vm13, %vm1089_vm0 }
 0x128   :  { %vm593_vm5 = vmand %vm591_vm1, %vm592_vm2  ;;  %v753_v2 = vsel %vm752_vm3, %v725_v21, %v734_v25  ;;  %v754_v33 = vsel %vm752_vm3, %v726_v24, %v741_v26 }
 0x129   :  { %vm594_vm6 = vmor %vm590_vm15, %vm593_vm5  ;;  %v762_v34 = vrot.slane %v753_v2, %v1096_v22  ;;  %v769_v35 = vrot.slane %v754_v33, %v1096_v22 }
 0x12a   :  { %vm599_vm7 = vmxor %vm594_vm6, %vm1105_vm14 }
 0x12b   :  { %v600_v36 = vsel %vm599_vm7, %v572_v28, %v581_v30  ;;  %v601_v37 = vsel %vm599_vm7, %v573_v29, %v588_v31  ;;  %vm771_vm8 = vcmp.gt.s32.totalorder %v753_v2, %v762_v34  ;;  %vm772_vm9 = vcmp.eq.s32.totalorder %v753_v2, %v762_v34 }
 0x12c   :  { %v615_v38 = vrot.slane %v600_v36, %v1070_v61  ;;  %v622_v39 = vrot.slane %v601_v37, %v1070_v61  ;;  %vm773_vm10 = vcmp.lt.s32.totalorder %v754_v33, %v769_v35 }
 0x12d   :  { %vm774_vm11 = vmand %vm772_vm9, %vm773_vm10 }
 0x12e   :  { %vm624_vm12 = vcmp.gt.s32.totalorder %v600_v36, %v615_v38  ;;  %vm625_vm13 = vcmp.eq.s32.totalorder %v600_v36, %v615_v38  ;;  %vm626_vm15 = vcmp.lt.s32.totalorder %v601_v37, %v622_v39  ;;  %vm775_vm1 = vmor %vm771_vm8, %vm774_vm11 }
 0x12f   :  { %vm627_vm2 = vmand %vm625_vm13, %vm626_vm15 }
 0x130   :  { %vm628_vm3 = vmor %vm624_vm12, %vm627_vm2 }
 0x131   :  { %vm633_vm5 = vmxor %vm628_vm3, %vm1077_vm4 }
 0x132   :  { %v634_v40 = vsel %vm633_vm5, %v600_v36, %v615_v38  ;;  %v635_v41 = vsel %vm633_vm5, %v601_v37, %v622_v39  ;;  %vm780_vm6 = vmxor %vm775_vm1, %vm1105_vm14 }
 0x133   :  { %v643_v42 = vrot.slane %v634_v40, %v1082_v13  ;;  %v650_v43 = vrot.slane %v635_v41, %v1082_v13  ;;  %v781_v44 = vsel %vm780_vm6, %v753_v2, %v762_v34  ;;  %v782_v45 = vsel %vm780_vm6, %v754_v33, %v769_v35 }
 0x134   :  { %v796_v46 = vrot.slane %v781_v44, %v1070_v61  ;;  %v803_v47 = vrot.slane %v782_v45, %v1070_v61 }
 0x135   :  { %vm652_vm7 = vcmp.gt.s32.totalorder %v634_v40, %v643_v42  ;;  %vm653_vm8 = vcmp.eq.s32.totalorder %v634_v40, %v643_v42  ;;  %vm654_vm9 = vcmp.lt.s32.totalorder %v635_v41, %v650_v43 }
 0x136   :  { %vm655_vm10 = vmand %vm653_vm8, %vm654_vm9  ;;  %vm806_vm11 = vcmp.eq.s32.totalorder %v781_v44, %v796_v46  ;;  %vm807_vm12 = vcmp.lt.s32.totalorder %v782_v45, %v803_v47  ;;  %vm805_vm15 = vcmp.gt.s32.totalorder %v781_v44, %v796_v46 }
 0x137   :  { %vm656_vm13 = vmor %vm652_vm7, %vm655_vm10 }
 0x138   :  { %vm661_vm1 = vmxor %vm656_vm13, %vm1089_vm0 }
 0x139   :  { %v662_v48 = vsel %vm661_vm1, %v634_v40, %v643_v42  ;;  %v663_v49 = vsel %vm661_vm1, %v635_v41, %v650_v43  ;;  %vm808_vm2 = vmand %vm806_vm11, %vm807_vm12 }
 0x13a   :  { %v671_v50 = vrot.slane %v662_v48, %v1096_v22  ;;  %v678_v51 = vrot.slane %v663_v49, %v1096_v22  ;;  %vm809_vm3 = vmor %vm805_vm15, %vm808_vm2 }
 0x13b   :  { %vm814_vm5 = vmxor %vm809_vm3, %vm1077_vm4 }
 0x13c   :  { %vm680_vm6 = vcmp.gt.s32.totalorder %v662_v48, %v671_v50  ;;  %vm681_vm8 = vcmp.eq.s32.totalorder %v662_v48, %v671_v50  ;;  %vm682_vm9 = vcmp.lt.s32.totalorder %v663_v49, %v678_v51  ;;  %v815_v52 = vsel %vm814_vm5, %v781_v44, %v796_v46 }
 0x13d   :  { %vm683_vm7 = vmand %vm681_vm8, %vm682_vm9  ;;  %v816_v53 = vsel %vm814_vm5, %v782_v45, %v803_v47  ;;  %v824_v54 = vrot.slane %v815_v52, %v1082_v13 }
 0x13e   :  { %vm684_vm10 = vmor %vm680_vm6, %vm683_vm7  ;;  %v831_v55 = vrot.slane %v816_v53, %v1082_v13 }
 0x13f   :  { %vm689_vm11 = vmxor %vm684_vm10, %vm1105_vm14  ;;  %vm833_vm12 = vcmp.gt.s32.totalorder %v815_v52, %v824_v54  ;;  %vm834_vm13 = vcmp.eq.s32.totalorder %v815_v52, %v824_v54 }
 0x140   :  { %v1135_v56 = vsel %vm689_vm11, %v662_v48, %v671_v50  ;;  %v691_v57 = vsel %vm689_vm11, %v663_v49, %v678_v51  ;;  %vm835_vm4 = vcmp.lt.s32.totalorder %v816_v53, %v831_v55 }
 0x141   :  { %vm836_vm15 = vmand %vm834_vm13, %vm835_vm4  ;;  %902 = vxpose.xlu0.b32.start.end [1/1] (short) (narrow) %v691_v57, 8  ;;  %vm878_vm10 = vcmp.lt.s32.totalorder %v1135_v56, 0  ;;  %v879_v7 = vsub.s32 2147483647, %v1135_v56 }
 0x142   :  { %vm837_vm1 = vmor %vm833_vm12, %vm836_vm15 }
 0x143   :  { %vm842_vm2 = vmxor %vm837_vm1, %vm1089_vm0  ;;  %v880_v8 = vsel %vm878_vm10, %v879_v7, %v1135_v56 }
 0x144   :  { %v843_v58 = vsel %vm842_vm2, %v815_v52, %v824_v54  ;;  %v844_v59 = vsel %vm842_vm2, %v816_v53, %v831_v55 }
 0x145   :  { %v852_v60 = vrot.slane %v843_v58, %v1096_v22  ;;  %v859_v61 = vrot.slane %v844_v59, %v1096_v22  ;;  %883 = vxpose.xlu0.b32.start.end [1/1] (short) (narrow) %v880_v8, 8 }
 0x147   :  { %vm861_vm3 = vcmp.gt.s32.totalorder %v843_v58, %v852_v60  ;;  %vm862_vm5 = vcmp.eq.s32.totalorder %v843_v58, %v852_v60  ;;  %vm863_vm6 = vcmp.lt.s32.totalorder %v844_v59, %v859_v61 }
 0x148   :  { %vm864_vm8 = vmand %vm862_vm5, %vm863_vm6 }
 0x149   :  { %vm865_vm9 = vmor %vm861_vm3, %vm864_vm8 }
 0x14a   :  { %vm870_vm7 = vmxor %vm865_vm9, %vm1105_vm14 }
 0x14b   :  { %v871_v62 = vsel %vm870_vm7, %v843_v58, %v852_v60  ;;  %v872_v63 = vsel %vm870_vm7, %v844_v59, %v859_v61 }
 0x14c   :  { %874 = vst [vmem:[#allocation13] sm:$0xff] %v871_v62  ;;  %875 = vst [vmem:[#allocation15] sm:$0xff] %v872_v63 }
 0x18b   :  { %v418_v0 = vpop.trf.xlu0 }
 0x18c   :  { %v457_v3 = vrot.slane %v418_v0, 1  ;;  %1004 = vpush %v418_v0 }
 0x18e   :  { %1006 = vpush %v457_v3 }
 0x1bd   :  { %s1005_s0 = spop %1004 }
 0x1be   :  { %s435_s11 = sshrl.u32 %s1005_s0, 9  ;;  %s437_s12 = ssub.s32 0, %s1005_s0 }
 0x1bf   :  { %p436_p0 = scmp.lt.s32.totalorder %s1005_s0, 0  ;;  %s993_s13 = smin.u32 %s1005_s0, %s437_s12 }
 0x1c0   :  { %s439_s14 = sand.u32 511, %s993_s13   ;;  %s995_s15 = sshll.u32 %s435_s11, 3 }
 0x1c1   :  { %s440_s16 = ssub.s32 0, %s439_s14  ;;  %s1007_s17 = spop %1006  ;;  %v903_v9 = vpop.trf.xlu0 }
 0x1c2   :  { %s1175_s16 = smov (!%p436_p0, %s440_s16), %s439_s14  ;;  %s461_s21 = ssub.s32 0, %s1007_s17  ;;  %919 = vst [vmem:[#allocation10] sm:$0xff] %v903_v9 }
 0x1c3   :  { %s442_s18 = sshrl.u32 %s1175_s16, 7  ;;  %s444_s19 = sand.u32 127, %s1175_s16  }
 0x1c4   :  { %s994_s20 = sshll.u32 %s442_s18, 8  ;;  %s997_s23 = smin.u32 %s1007_s17, %s461_s21 }
 0x1c5   :  { %s445_s22 = sadd.s32 %s994_s20, %s444_s19  ;;  %p460_p1 = scmp.lt.s32.totalorder %s1007_s17, 0  ;;  %v884_v10 = vpop.trf.xlu0 }
 0x1c6   :  { %v447_v4 = vstv %s445_s22  ;;  %s463_s24 = sand.u32 511, %s997_s23   ;;  %s451_s26 = scalar_lea.vmem [#allocation16], %s995_s15  ;;  %900 = vst [vmem:[#allocation7] sm:$0xff] %v884_v10 }
 0x1c7   :  { %vm449_vm0 = vcmp.eq.s32.totalorder %v46_v1, %v447_v4  ;;  %s464_s25 = ssub.s32 0, %s463_s24  ;;  %s459_s27 = sshrl.u32 %s1007_s17, 9 }
 0x1c8   :  { %452 = vst.msk [vmem:[%s451_s26] sm:$0xff] %vm449_vm0, %v1039_v23  ;;  %s1177_s25 = smov (!%p460_p1, %s464_s25), %s463_s24  ;;  %s999_s4 = sshll.u32 %s459_s27, 3 }
 0x1c9   :  { %s466_s28 = sshrl.u32 %s1177_s25, 7  ;;  %s468_s29 = sand.u32 127, %s1177_s25   ;;  %v929_v11 = vld [vmem:[#allocation10] sm:$0x3] }
 0x1ca   :  { %s998_s30 = sshll.u32 %s466_s28, 8  ;;  %s475_s5 = scalar_lea.vmem [#allocation16], %s999_s4  ;;  %931 = vst [vmem:[#allocation11] sm:$0x3] %v929_v11 }
 0x1cb   :  { %s469_s3 = sadd.s32 %s998_s30, %s468_s29 }
 0x1cc   :  { %v471_v5 = vstv %s469_s3 }
 0x1cd   :  { %v472_v6 = vadd.s32 128, %v471_v5 }
 0x1cf   :  { %vm473_vm14 = vcmp.eq.s32.totalorder %v46_v1, %v472_v6  ;;  %v923_v1 = vld [vmem:[#allocation7] sm:$0x3] }
 0x1d0   :  { %476 = vst.msk [vmem:[%s475_s5] sm:$0xff] %vm473_vm14, %v1039_v23  ;;  %925 = vst [vmem:[#allocation8] sm:$0x3] %v923_v1 }
 0x1d1   :  { %1026 = shalt.err (!%p1023_p6)
}
 0x1d2   :  { %s1027_s0 = scalar_lea.hbm %s1166_s1, 32 }
 0x1d3   :  { %p1028_p7 = scmp.ne.s32.totalorder %s1166_s1, %s1027_s0  ;;  %p1031_p8 = scmp.lt.u32.totalorder %s1027_s0, %s1166_s1 }
 0x1d5   :  { %p1033_p9 = pnand %p1031_p8, %p1028_p7 }
 0x1d7   :  { %1036 = shalt.err (!%p1033_p9)
}
 0x1d8   :  { %939 = dma.vmem_to_hbm [thread:$0]  %s937_s7, 32, %s1166_s1, [#allocation9]   ;;  %v955_v23 = vld [vmem:[#allocation11] sm:$0x3] }
 0x1d9   :  { %956 = vst [vmem:[%s1167_s2] sm:$0x3] %v955_v23 }
 0x1da   :  { %1037 = dma.done.wait [#allocation9], 32  }
 0x1db   :  { %1038 = vsyncadd [#allocation9], 4294967264 }
 0x1dc   :  { %972 = vsyncpa [#allocation9], 1 }

// kernel: _dprompt_core.4
= control target key start
LH: loop header
LB: loop body
LE: loop exit
PB: predicated region body
PF: predicated region fallthrough
CT: control target
= control target key end

     0   :  { %6 = vsyncpa [#allocation3], 0  ;;  %s62_s6 = smov [#allocation2]   ;;  %s88_s0 = inlined_call_operand.hbm [shape: f32[4,32], index: 0, kind: input, shape index: {}]   ;;  %s89_s1 = inlined_call_operand.vmem [shape: f32[4,32], index: 1, kind: output, shape index: {}]  }
   0x1   :  { %s13_s7 = sshll.u32 %s62_s6, 4  ;;  %s38_s10 = scalar_lea.hbm %s88_s0, 64  ;;  %s14_s7 = int_to_ptr.vmem [resolvable:$true] %s13_s7 }
   0x2   :  { %p39_p0 = scmp.ne.s32.totalorder %s88_s0, %s38_s10  ;;  %p42_p1 = scmp.lt.u32.totalorder %s38_s10, %s88_s0 }
   0x4   :  { %p44_p2 = pnand %p42_p1, %p39_p0 }
   0x6   :  { %47 = shalt.err (!%p44_p2)
}
   0x7   :  { %s48_s15 = scalar_lea.vmem %s14_s7, 64  ;;  %p53_p4 = scmp.lt.s32.totalorder %s14_s7, %s14_s7 }
   0x8   :  { %p49_p3 = scmp.ne.s32.totalorder %s14_s7, %s48_s15  ;;  %p54_p5 = scmp.lt.s32.totalorder %s48_s15, %s48_s15 }
   0xa   :  { %p55_p6 = por %p54_p5, %p53_p4 }
   0xc   :  { %p56_p7 = pnand %p55_p6, %p49_p3 }
   0xe   :  { %59 = shalt.err (!%p56_p7)
}
   0xf   :  { %16 = dma.hbm_to_vmem [thread:$0]  %s88_s0, 64, %s14_s7, [#allocation3]  }
  0x10   :  { %60 = dma.done.wait [#allocation3], 64  }
  0x11   :  { %61 = vsyncadd [#allocation3], 4294967232  ;;  %v20_v0 = vld [vmem:[#allocation2] sm:$0xf]  ;;  %vm22_vm0 = vcmask 257024  }
  0x12   :  { %v21_v1 = vmul.f32 %v20_v0, %v20_v0 }
  0x14   :  { %v23_v2 = vsel %vm22_vm0, %v21_v1, 0.0 }
  0x15   :  { %24 = vadd.xlane.f32.xlu0 %v23_v2 }
  0xa2   :  { %v25_v3 = vpop.xlane.xlu0 %24 }
  0xa3   :  { %v26_v4 = vmax.f32 %v25_v3, 1e-12 }
  0xa5   :  { %36 = vrsqrt.f32 %v26_v4 }
  0xaf   :  { %v37_v5 = vpop.eup %36 }
  0xb0   :  { %v28_v6 = vmul.f32 %v37_v5, %v20_v0 }
  0xb2   :  { %29 = vst.msk [vmem:[%s89_s1] sm:$0xf] %vm22_vm0, %v28_v6 }
  0xb3   :  { %34 = vsyncpa [#allocation3], 1 }

// kernel: _dprompt_core.5
= control target key start
LH: loop header
LB: loop body
LE: loop exit
PB: predicated region body
PF: predicated region fallthrough
CT: control target
= control target key end

     0   :  { %vm15_vm0 = vcmask 261120   ;;  %vm34_vm1 = vcmask 1041409   ;;  %vm37_vm2 = vcmask 254976   ;;  %v154_v20 = vmov 0.0   ;;  %s199_s0 = inlined_call_operand.vmem [shape: f32[2,8,32], index: 0, kind: input, shape index: {}]   ;;  %s200_s1 = inlined_call_operand.vmem [shape: f32[4,32], index: 1, kind: input, shape index: {}]   ;;  %s201_s2 = inlined_call_operand.vmem [shape: f32[2,32], index: 2, kind: output, shape index: {0}]   ;;  %s202_s3 = inlined_call_operand.vmem [shape: f32[2,4], index: 3, kind: output, shape index: {1}]  }
   0x1   :  { %v13_v0 = vld [vmem:[%s199_s0] sm:$0xff]  ;;  %v14_v1 = vld [vmem:[%s199_s0 + $0x8] sm:$0xff]  ;;  %145 = vmatprep.subr.mxu0 %v154_v20  ;;  %vm155_vm3 = vmmov 0   ;;  %vm131_vm4 = vcmask 25600  }
   0x2   :  { %v16_v2 = vsel %vm15_vm0, %v13_v0, -inf  ;;  %v23_v3 = vsel %vm15_vm0, %v14_v1, -inf  ;;  %v55_v21 = vld [vmem:[%s200_s1] sm:$0xf]  ;;  %147 = vmatprep.mubr.msk.f32.mxu0 %vm155_vm3, %v154_v20 }
   0x3   :  { %v17_v4 = vrot.slane %v16_v2, 4  ;;  %v24_v5 = vrot.slane %v23_v3, 4  ;;  %146 = vmatpush3.xpose.msk.msra.mxu0 %vm15_vm0, %v55_v21 }
   0x5   :  { %v18_v6 = vmax.f32 %v16_v2, %v17_v4  ;;  %v25_v7 = vmax.f32 %v23_v3, %v24_v5 }
   0x7   :  { %v19_v8 = vrot.slane %v18_v6, 2  ;;  %v26_v9 = vrot.slane %v25_v7, 2 }
   0x9   :  { %v20_v10 = vmax.f32 %v18_v6, %v19_v8  ;;  %v27_v11 = vmax.f32 %v25_v7, %v26_v9 }
   0xb   :  { %v21_v12 = vrot.slane %v20_v10, 1  ;;  %v28_v13 = vrot.slane %v27_v11, 1 }
   0xd   :  { %v22_v14 = vmax.f32 %v20_v10, %v21_v12  ;;  %v29_v15 = vmax.f32 %v27_v11, %v28_v13 }
   0xf   :  { %v30_v16 = vmul.f32 %v22_v14, %v22_v14  ;;  %v31_v17 = vmul.f32 %v29_v15, %v29_v15 }
  0x11   :  { %v35_v18 = vsel %vm34_vm1, %v31_v17, %v30_v16 }
  0x12   :  { %v38_v19 = vsel %vm37_vm2, %v35_v18, 0.0 }
  0x13   :  { %39 = vadd.xlane.f32.xlu0 %v38_v19 }
  0xa0   :  { %v40_v22 = vpop.xlane.xlu0 %39 }
  0xa1   :  { %v41_v23 = vmax.f32 %v40_v22, 1e-12 }
  0xa3   :  { %152 = vrsqrt.f32 %v41_v23 }
  0xad   :  { %v153_v24 = vpop.eup %152 }
  0xae   :  { %v44_v25 = vrot.slane %v153_v24, 1  ;;  %v47_v27 = vmul.f32 %v153_v24, %v22_v14 }
  0xb0   :  { %v48_v26 = vmul.f32 %v44_v25, %v29_v15 }
  0xb2   :  { %v51_v28 = vrot.slane %v48_v26, 7 }
  0xb4   :  { %v52_v29 = vsel %vm34_vm1, %v51_v28, %v47_v27 }
  0xb5   :  { %54 = vst.msk [vmem:[%s201_s2] sm:$0x3] %vm37_vm2, %v52_v29  ;;  %148 = vmatmul.mubr.msk.f32.vlgmr.msra.gmra.mrb[0].mxu0 %vm15_vm0, %v52_v29 }
 0x188   :  { %v127_v30 = vpop.f32.mrb[0].mxu0 }
 0x189   :  { %132 = vst.msk [vmem:[%s202_s3] sm:$0x3] %vm131_vm4, %v127_v30  ;;  %v149_v31 = vpop.f32.mrb[1].mxu0 }

// kernel: _dprompt_core.6
= control target key start
LH: loop header
LB: loop body
LE: loop exit
PB: predicated region body
PF: predicated region fallthrough
CT: control target
= control target key end

     0   :  { %vm38_vm0 = vcmask 253952   ;;  %vm33_vm1 = vcmask 257024   ;;  %s102_s0 = inlined_call_operand.<no memory space> [shape: s32[1], index: 0, kind: input, shape index: {}]   ;;  %s103_s2 = inlined_call_operand.vmem [shape: f32[4,32], index: 2, kind: input, shape index: {}]   ;;  %s104_s4 = inlined_call_operand.vmem [shape: f32[1,1,32], index: 4, kind: output, shape index: {1}]   ;;  %s105_s1 = inlined_call_operand.vmem [shape: f32[4,4,32], index: 1, kind: input, shape index: {}]   ;;  %s106_s3 = inlined_call_operand.vmem [shape: f32[1,4,32], index: 3, kind: output, shape index: {0}]  }
   0x1   :  { %p27_p0 = scmp.lt.s32.totalorder %s102_s0, 3  ;;  %s36_s21 = scalar_lea.vmem %s103_s2, %s102_s0 }
   0x2   :  { %v37_v0 = vld [vmem:[%s36_s21] sm:$0x1] }
   0x3   :  { %s108_s0 = smov (!%p27_p0, %s102_s0), 3  ;;  %39 = vst.msk [vmem:[%s104_s4] sm:$0x1] %vm38_vm0, %v37_v0 }
   0x4   :  { %s55_s26 = sshll.u32 %s108_s0, 2 }
   0x5   :  { %s30_s29 = scalar_lea.vmem %s105_s1, %s55_s26 }
   0x6   :  { %v32_v1 = vld [vmem:[%s30_s29] sm:$0xf] }
   0x7   :  { %34 = vst.msk [vmem:[%s106_s3] sm:$0xf] %vm33_vm1, %v32_v1 }

// kernel: _dprompt_core.7
= control target key start
LH: loop header
LB: loop body
LE: loop exit
PB: predicated region body
PF: predicated region fallthrough
CT: control target
= control target key end

     0   :  { %vm12_vm0 = vcmask 257024   ;;  %vm17_vm1 = vcmask 261120   ;;  %s60_s0 = inlined_call_operand.vmem [shape: f32[4,32], index: 0, kind: input, shape index: {}]   ;;  %s61_s2 = inlined_call_operand.vmem [shape: f32[2,12,32], index: 2, kind: output, shape index: {}]   ;;  %s62_s1 = inlined_call_operand.vmem [shape: f32[2,8,32], index: 1, kind: input, shape index: {}]  }
   0x1   :  { %v11_v0 = vld [vmem:[%s60_s0] sm:$0xf]  ;;  %v16_v2 = vld [vmem:[%s62_s1 + $0x8] sm:$0xff] }
   0x2   :  { %v15_v1 = vld [vmem:[%s62_s1] sm:$0xff]  ;;  %13 = vst.msk [vmem:[%s61_s2] sm:$0xf] %vm12_vm0, %v11_v0  ;;  %14 = vst.msk [vmem:[%s61_s2 + $0x10] sm:$0xf] %vm12_vm0, %v11_v0 }
   0x3   :  { %18 = vst.msk [vmem:[%s61_s2 + $0x4] sm:$0xff] %vm17_vm1, %v15_v1  ;;  %19 = vst.msk [vmem:[%s61_s2 + $0x14] sm:$0xff] %vm17_vm1, %v16_v2 }

</bundles_post_ra>
